<compile_context>
chip_gen: v7x
topology: tpu7x:2x2x1
jax: 0.10.0
libtpu: 0.0.40
codegen_flags: <defaults>
</compile_context>

<pallas_src>
import numpy as np
import jax
import jax.numpy as jnp
from jax import lax
from jax.experimental import pallas as pl
from jax.experimental.pallas import tpu as pltpu

# ----------------------------- configuration -------------------------------
B = 2            # batch
S = 8            # sequence length (includes [CLS]/[SEP])
H = 32           # hidden size
NH = 2           # attention heads
HD = H // NH     # head dim
I = 64           # FFN intermediate size
L = 28           # num_labels
V = 100          # vocab size
TYPES = 2        # token type vocab
EPS = 1e-12

WEIGHT_ORDER = ["word_emb", "type_emb", "pos_emb", "ln0g", "ln0b",
                "wqkv", "bqkv", "wo", "bo", "ln1g", "ln1b",
                "w1", "b1", "w2", "b2", "ln2g", "ln2b", "wc", "bc"]


def _layer_norm(x, g, b):
    mu = jnp.mean(x, axis=-1, keepdims=True)
    var = jnp.mean((x - mu) ** 2, axis=-1, keepdims=True)
    return (x - mu) * lax.rsqrt(var + EPS) * g + b


# ---------------- fused kernel: embed + encoder + classify + strip ----------
def ner1_kernel(real_len_ref,                       # scalar prefetch (SMEM, (B,))
                ids_ref, tt_ref, mask_ref,          # per-batch-row inputs
                word_emb, type_emb, pos_emb,
                ln0g, ln0b, wqkv, bqkv, wo, bo,
                ln1g, ln1b, w1, b1, w2, b2, ln2g, ln2b,
                wc, bc,
                nlog_ref, nmask_ref):
    b = pl.program_id(0)

    # ---- embeddings: one-hot word matmul + 2-way token-type select + pos ----
    ids_col = ids_ref[0]                            # (S, 1) int32
    tt_col = tt_ref[0]                              # (S, 1) int32
    onehot = (lax.broadcasted_iota(jnp.int32, (S, V), 1) == ids_col)
    w_emb = jnp.dot(onehot.astype(jnp.float32), word_emb[...],
                    preferred_element_type=jnp.float32)          # (S, H)
    t_emb = jnp.where(tt_col == 0, type_emb[0:1, :], type_emb[1:2, :])
    emb = w_emb + t_emb + pos_emb[...]

    mask = mask_ref[0]                              # (1, S) f32 (1 keep / 0 pad)
    bias = (1.0 - mask) * (-1e4)

    x = _layer_norm(emb, ln0g[...], ln0b[...])

    # ---- fused QKV projection: one (S,H)x(H,3H) matmul ----
    qkv = jnp.dot(x, wqkv[...], preferred_element_type=jnp.float32) + bqkv[...]

    scale = np.float32(1.0 / np.sqrt(HD))
    attn = None
    for h in range(NH):                             # NH = 2, static unroll
        q_h = qkv[:, h * HD:(h + 1) * HD]
        k_h = qkv[:, H + h * HD:H + (h + 1) * HD]
        v_h = qkv[:, 2 * H + h * HD:2 * H + (h + 1) * HD]
        s = jnp.dot(q_h, k_h.T, preferred_element_type=jnp.float32) * scale + bias
        m = jnp.max(s, axis=-1, keepdims=True)
        e = jnp.exp(s - m)
        p = e * pl.reciprocal(jnp.sum(e, axis=-1, keepdims=True), approx=True)
        ctx_h = jnp.dot(p, v_h, preferred_element_type=jnp.float32)     # (S, HD)
        # no concat: project each head through its row-block of W_o and sum
        part = jnp.dot(ctx_h, wo[h * HD:(h + 1) * HD, :],
                       preferred_element_type=jnp.float32)              # (S, H)
        attn = part if attn is None else attn + part
    attn_out = attn + bo[...]

    x1 = _layer_norm(x + attn_out, ln1g[...], ln1b[...])
    hff = jax.nn.gelu(jnp.dot(x1, w1[...], preferred_element_type=jnp.float32)
                      + b1[...])
    ff = jnp.dot(hff, w2[...], preferred_element_type=jnp.float32) + b2[...]
    x2 = _layer_norm(x1 + ff, ln2g[...], ln2b[...])

    # TODO(synk): nn.Dropout(0.1) is identity in eval mode; omitted.
    logits = jnp.dot(x2, wc[...], preferred_element_type=jnp.float32) + bc[...]

    # ---- strip [CLS] (row 0) and [SEP] (row real_len-1) while in VMEM ----
    sentlen = real_len_ref[b] - 2
    r = lax.broadcasted_iota(jnp.int32, (S - 2, S), 0)
    c = lax.broadcasted_iota(jnp.int32, (S - 2, S), 1)
    src = jnp.where(r < sentlen, r + 1, r + 2)
    G = (c == src).astype(jnp.float32)              # (S-2, S) gather matrix
    nlog_ref[...] = jnp.dot(G, logits, preferred_element_type=jnp.float32)[None]
    # reuse G for the mask: one masked row-reduction, no Gt / second matmul
    nmask_ref[...] = jnp.sum(G * mask, axis=-1, keepdims=True)[None]   # (1,S-2,1)


def _wspec(shape):
    n = len(shape)
    return pl.BlockSpec(shape, lambda b, rl, _n=n: (0,) * _n)


def prepare_pallas_params(params):
    """Fuse wq|wk|wv (and biases) once on the host; keep kernel weight order."""
    fused = dict(params)
    fused["wqkv"] = jnp.concatenate([params["wq"], params["wk"], params["wv"]],
                                    axis=1)                      # (H, 3H)
    fused["bqkv"] = jnp.concatenate([params["bq"], params["bk"], params["bv"]],
                                    axis=1)                      # (1, 3H)
    return {k: fused[k] for k in WEIGHT_ORDER}


@jax.jit
def ner1_forward(pparams, ids, token_type_ids, attention_mask, real_len):
    weights = [pparams[k] for k in WEIGHT_ORDER]
    ids3 = ids.astype(jnp.int32)[..., None]                      # (B, S, 1)
    tt3 = token_type_ids.astype(jnp.int32)[..., None]            # (B, S, 1)
    mask3 = attention_mask.astype(jnp.float32)[:, None, :]       # (B, 1, S)

    grid_spec = pltpu.PrefetchScalarGridSpec(
        num_scalar_prefetch=1,
        grid=(B,),
        in_specs=[pl.BlockSpec((1, S, 1), lambda b, rl: (b, 0, 0)),
                  pl.BlockSpec((1, S, 1), lambda b, rl: (b, 0, 0)),
                  pl.BlockSpec((1, 1, S), lambda b, rl: (b, 0, 0))]
                 + [_wspec(w.shape) for w in weights],
        out_specs=[pl.BlockSpec((1, S - 2, L), lambda b, rl: (b, 0, 0)),
                   pl.BlockSpec((1, S - 2, 1), lambda b, rl: (b, 0, 0))],
    )
    new_logits, new_mask = pl.pallas_call(
        ner1_kernel,
        out_shape=(jax.ShapeDtypeStruct((B, S - 2, L), jnp.float32),
                   jax.ShapeDtypeStruct((B, S - 2, 1), jnp.float32)),
        grid_spec=grid_spec,
        compiler_params=pltpu.CompilerParams(
            dimension_semantics=("parallel",)),     # megacore: 1 row per TC on v7x
    )(real_len.astype(jnp.int32), ids3, tt3, mask3, *weights)
    return new_logits, new_mask[..., 0]


# ------------------------------ pure-JAX ref -------------------------------
def ner1_reference(params, ids, token_type_ids, attention_mask, real_len):
    emb = (params["word_emb"][ids] + params["type_emb"][token_type_ids]
           + params["pos_emb"][None, :S, :])
    mask = attention_mask.astype(jnp.float32)
    bias = (1.0 - mask)[:, None, :] * (-1e4)
    x = _layer_norm(emb, params["ln0g"], params["ln0b"])
    q = x @ params["wq"] + params["bq"]
    k = x @ params["wk"] + params["bk"]
    v = x @ params["wv"] + params["bv"]
    qh = q.reshape(B, S, NH, HD).transpose(0, 2, 1, 3)
    kh = k.reshape(B, S, NH, HD).transpose(0, 2, 1, 3)
    vh = v.reshape(B, S, NH, HD).transpose(0, 2, 1, 3)
    sc = jnp.einsum("bhqd,bhkd->bhqk", qh, kh) / np.sqrt(HD) + bias[:, None]
    p = jax.nn.softmax(sc, axis=-1)
    ctx = jnp.einsum("bhqk,bhkd->bhqd", p, vh).transpose(0, 2, 1, 3).reshape(B, S, H)
    x1 = _layer_norm(x + ctx @ params["wo"] + params["bo"],
                     params["ln1g"], params["ln1b"])
    ff = jax.nn.gelu(x1 @ params["w1"] + params["b1"]) @ params["w2"] + params["b2"]
    x2 = _layer_norm(x1 + ff, params["ln2g"], params["ln2b"])
    logits = x2 @ params["wc"] + params["bc"]
    nl, nm = [], []
    for b in range(B):
        sl = int(real_len[b]) - 2
        nl.append(jnp.concatenate([logits[b, 1:sl + 1], logits[b, sl + 2:]], 0))
        nm.append(jnp.concatenate([mask[b, 1:sl + 1], mask[b, sl + 2:]], 0))
    return jnp.stack(nl), jnp.stack(nm)


# --------------------------------- main -------------------------------------
def init_params(key):
    ks = jax.random.split(key, 16)
    std = 0.02
    p = {
        "word_emb": jax.random.normal(ks[0], (V, H), jnp.float32) * std,
        "type_emb": jax.random.normal(ks[1], (TYPES, H), jnp.float32) * std,
        "pos_emb": jax.random.normal(ks[2], (S, H), jnp.float32) * std,
        "ln0g": jnp.ones((1, H), jnp.float32), "ln0b": jnp.zeros((1, H), jnp.float32),
        "wq": jax.random.normal(ks[3], (H, H), jnp.float32) * std,
        "bq": jnp.zeros((1, H), jnp.float32),
        "wk": jax.random.normal(ks[4], (H, H), jnp.float32) * std,
        "bk": jnp.zeros((1, H), jnp.float32),
        "wv": jax.random.normal(ks[5], (H, H), jnp.float32) * std,
        "bv": jnp.zeros((1, H), jnp.float32),
        "wo": jax.random.normal(ks[6], (H, H), jnp.float32) * std,
        "bo": jnp.zeros((1, H), jnp.float32),
        "ln1g": jnp.ones((1, H), jnp.float32), "ln1b": jnp.zeros((1, H), jnp.float32),
        "w1": jax.random.normal(ks[7], (H, I), jnp.float32) * std,
        "b1": jnp.zeros((1, I), jnp.float32),
        "w2": jax.random.normal(ks[8], (I, H), jnp.float32) * std,
        "b2": jnp.zeros((1, H), jnp.float32),
        "ln2g": jnp.ones((1, H), jnp.float32), "ln2b": jnp.zeros((1, H), jnp.float32),
        "wc": jax.random.normal(ks[9], (H, L), jnp.float32) * std,
        "bc": jnp.zeros((1, L), jnp.float32),
    }
    return p


if __name__ == "__main__":
    key = jax.random.PRNGKey(0)
    pkey, ikey = jax.random.split(key)
    params = init_params(pkey)
    pparams = prepare_pallas_params(params)         # one-time host-side QKV fusion

    ids_tensor = jax.random.randint(ikey, (B, S), 0, V, dtype=jnp.int32)
    token_type_ids = jnp.zeros((B, S), jnp.int32)
    real_len = jnp.array([S, S - 2], jnp.int32)      # e.g. [8, 6]
    attention_mask = (jnp.arange(S)[None, :] < real_len[:, None]).astype(jnp.int32)

    new_logits, new_mask = ner1_forward(pparams, ids_tensor, token_type_ids,
                                        attention_mask, real_len)
    jax.block_until_ready((new_logits, new_mask))

    ref_logits, ref_mask = ner1_reference(params, ids_tensor, token_type_ids,
                                          attention_mask, real_len)
    assert new_logits.shape == (B, S - 2, L)
    assert new_mask.shape == (B, S - 2)
    np.testing.assert_allclose(np.asarray(new_logits), np.asarray(ref_logits),
                               rtol=2e-4, atol=2e-4)
    np.testing.assert_allclose(np.asarray(new_mask), np.asarray(ref_mask),
                               rtol=1e-5, atol=1e-5)
    print("KERNEL_OK")
</pallas_src>

<mosaic_0001>
module attributes {stable_mosaic.version = 11 : i64} {
  func.func @ner1_kernel(%arg0: i32, %arg1: memref<2xi32, #tpu.memory_space<smem>>, %arg2: memref<1x8x1xi32, #tpu.memory_space<vmem>>, %arg3: memref<1x8x1xi32, #tpu.memory_space<vmem>>, %arg4: memref<1x1x8xf32, #tpu.memory_space<vmem>>, %arg5: memref<100x32xf32, #tpu.memory_space<vmem>>, %arg6: memref<2x32xf32, #tpu.memory_space<vmem>>, %arg7: memref<8x32xf32, #tpu.memory_space<vmem>>, %arg8: memref<1x32xf32, #tpu.memory_space<vmem>>, %arg9: memref<1x32xf32, #tpu.memory_space<vmem>>, %arg10: memref<32x96xf32, #tpu.memory_space<vmem>>, %arg11: memref<1x96xf32, #tpu.memory_space<vmem>>, %arg12: memref<32x32xf32, #tpu.memory_space<vmem>>, %arg13: memref<1x32xf32, #tpu.memory_space<vmem>>, %arg14: memref<1x32xf32, #tpu.memory_space<vmem>>, %arg15: memref<1x32xf32, #tpu.memory_space<vmem>>, %arg16: memref<32x64xf32, #tpu.memory_space<vmem>>, %arg17: memref<1x64xf32, #tpu.memory_space<vmem>>, %arg18: memref<64x32xf32, #tpu.memory_space<vmem>>, %arg19: memref<1x32xf32, #tpu.memory_space<vmem>>, %arg20: memref<1x32xf32, #tpu.memory_space<vmem>>, %arg21: memref<1x32xf32, #tpu.memory_space<vmem>>, %arg22: memref<32x28xf32, #tpu.memory_space<vmem>>, %arg23: memref<1x28xf32, #tpu.memory_space<vmem>>, %arg24: memref<1x6x28xf32, #tpu.memory_space<vmem>>, %arg25: memref<1x6x1xf32, #tpu.memory_space<vmem>>) attributes {dimension_semantics = [#tpu.dimension_semantics<parallel>], iteration_bounds = array<i64: 2>, scalar_prefetch = 1 : i64, scratch_operands = 0 : i64, tpu.core_type = #tpu.core_type<tc>, window_params = [{transform_indices = @transform_0, window_bounds = array<i64: 1, 8, 1>}, {transform_indices = @transform_1, window_bounds = array<i64: 1, 8, 1>}, {transform_indices = @transform_2, window_bounds = array<i64: 1, 1, 8>}, {pipeline_mode = #tpu.pipeline_mode<synchronous>, transform_indices = @transform_3, window_bounds = array<i64: 100, 32>}, {pipeline_mode = #tpu.pipeline_mode<synchronous>, transform_indices = @transform_4, window_bounds = array<i64: 2, 32>}, {pipeline_mode = #tpu.pipeline_mode<synchronous>, transform_indices = @transform_5, window_bounds = array<i64: 8, 32>}, {pipeline_mode = #tpu.pipeline_mode<synchronous>, transform_indices = @transform_6, window_bounds = array<i64: 1, 32>}, {pipeline_mode = #tpu.pipeline_mode<synchronous>, transform_indices = @transform_7, window_bounds = array<i64: 1, 32>}, {pipeline_mode = #tpu.pipeline_mode<synchronous>, transform_indices = @transform_8, window_bounds = array<i64: 32, 96>}, {pipeline_mode = #tpu.pipeline_mode<synchronous>, transform_indices = @transform_9, window_bounds = array<i64: 1, 96>}, {pipeline_mode = #tpu.pipeline_mode<synchronous>, transform_indices = @transform_10, window_bounds = array<i64: 32, 32>}, {pipeline_mode = #tpu.pipeline_mode<synchronous>, transform_indices = @transform_11, window_bounds = array<i64: 1, 32>}, {pipeline_mode = #tpu.pipeline_mode<synchronous>, transform_indices = @transform_12, window_bounds = array<i64: 1, 32>}, {pipeline_mode = #tpu.pipeline_mode<synchronous>, transform_indices = @transform_13, window_bounds = array<i64: 1, 32>}, {pipeline_mode = #tpu.pipeline_mode<synchronous>, transform_indices = @transform_14, window_bounds = array<i64: 32, 64>}, {pipeline_mode = #tpu.pipeline_mode<synchronous>, transform_indices = @transform_15, window_bounds = array<i64: 1, 64>}, {pipeline_mode = #tpu.pipeline_mode<synchronous>, transform_indices = @transform_16, window_bounds = array<i64: 64, 32>}, {pipeline_mode = #tpu.pipeline_mode<synchronous>, transform_indices = @transform_17, window_bounds = array<i64: 1, 32>}, {pipeline_mode = #tpu.pipeline_mode<synchronous>, transform_indices = @transform_18, window_bounds = array<i64: 1, 32>}, {pipeline_mode = #tpu.pipeline_mode<synchronous>, transform_indices = @transform_19, window_bounds = array<i64: 1, 32>}, {pipeline_mode = #tpu.pipeline_mode<synchronous>, transform_indices = @transform_20, window_bounds = array<i64: 32, 28>}, {pipeline_mode = #tpu.pipeline_mode<synchronous>, transform_indices = @transform_21, window_bounds = array<i64: 1, 28>}, {transform_indices = @transform_22, window_bounds = array<i64: 1, 6, 28>}, {transform_indices = @transform_23, window_bounds = array<i64: 1, 6, 1>}]} {
    %c0 = arith.constant 0 : index
    %c0_0 = arith.constant 0 : index
    %c0_1 = arith.constant 0 : index
    %0 = vector.load %arg2[%c0, %c0_0, %c0_1] : memref<1x8x1xi32, #tpu.memory_space<vmem>>, vector<1x8x1xi32>
    %1 = vector.shape_cast %0 : vector<1x8x1xi32> to vector<8x1xi32>
    %c0_2 = arith.constant 0 : index
    %c0_3 = arith.constant 0 : index
    %c0_4 = arith.constant 0 : index
    %2 = vector.load %arg3[%c0_2, %c0_3, %c0_4] : memref<1x8x1xi32, #tpu.memory_space<vmem>>, vector<1x8x1xi32>
    %3 = vector.shape_cast %2 : vector<1x8x1xi32> to vector<8x1xi32>
    %4 = tpu.iota {dimensions = array<i32: 1>} : vector<8x100xi32>
    %5 = vector.broadcast %1 : vector<8x1xi32> to vector<8x100xi32>
    %6 = arith.cmpi eq, %4, %5 : vector<8x100xi32>
    %7 = arith.extui %6 : vector<8x100xi1> to vector<8x100xi32>
    %8 = arith.sitofp %7 : vector<8x100xi32> to vector<8x100xf32>
    %c0_5 = arith.constant 0 : index
    %c0_6 = arith.constant 0 : index
    %9 = vector.load %arg5[%c0_5, %c0_6] : memref<100x32xf32, #tpu.memory_space<vmem>>, vector<100x32xf32>
    %cst = arith.constant dense<0.000000e+00> : vector<8x32xf32>
    %10 = tpu.matmul %8, %9, %cst {dimension_numbers = #tpu.dot_dimension_numbers<[1], [0], [0], [1], [0, 0, 1, 1], [], []>} : vector<8x100xf32>, vector<100x32xf32>, vector<8x32xf32> -> vector<8x32xf32>
    %c0_i32 = arith.constant 0 : i32
    %11 = vector.broadcast %c0_i32 : i32 to vector<8x1xi32>
    %12 = arith.cmpi eq, %3, %11 : vector<8x1xi32>
    %c0_7 = arith.constant 0 : index
    %c0_8 = arith.constant 0 : index
    %13 = vector.load %arg6[%c0_7, %c0_8] : memref<2x32xf32, #tpu.memory_space<vmem>>, vector<1x32xf32>
    %c1 = arith.constant 1 : index
    %c0_9 = arith.constant 0 : index
    %14 = vector.load %arg6[%c1, %c0_9] : memref<2x32xf32, #tpu.memory_space<vmem>>, vector<1x32xf32>
    %15 = vector.shape_cast %12 : vector<8x1xi1> to vector<8x1xi1>
    %16 = vector.broadcast %15 : vector<8x1xi1> to vector<8x32xi1>
    %17 = vector.shape_cast %13 : vector<1x32xf32> to vector<1x32xf32>
    %18 = vector.broadcast %17 : vector<1x32xf32> to vector<8x32xf32>
    %19 = vector.shape_cast %14 : vector<1x32xf32> to vector<1x32xf32>
    %20 = vector.broadcast %19 : vector<1x32xf32> to vector<8x32xf32>
    %21 = arith.select %16, %18, %20 : vector<8x32xi1>, vector<8x32xf32>
    %22 = arith.addf %10, %21 : vector<8x32xf32>
    %c0_10 = arith.constant 0 : index
    %c0_11 = arith.constant 0 : index
    %23 = vector.load %arg7[%c0_10, %c0_11] : memref<8x32xf32, #tpu.memory_space<vmem>>, vector<8x32xf32>
    %24 = arith.addf %22, %23 : vector<8x32xf32>
    %c0_12 = arith.constant 0 : index
    %c0_13 = arith.constant 0 : index
    %c0_14 = arith.constant 0 : index
    %25 = vector.load %arg4[%c0_12, %c0_13, %c0_14] : memref<1x1x8xf32, #tpu.memory_space<vmem>>, vector<1x1x8xf32>
    %26 = vector.shape_cast %25 : vector<1x1x8xf32> to vector<1x8xf32>
    %cst_15 = arith.constant 1.000000e+00 : f32
    %27 = vector.broadcast %cst_15 : f32 to vector<1x8xf32>
    %28 = arith.subf %27, %26 : vector<1x8xf32>
    %cst_16 = arith.constant -1.000000e+04 : f32
    %29 = vector.broadcast %cst_16 : f32 to vector<1x8xf32>
    %30 = arith.mulf %28, %29 : vector<1x8xf32>
    %c0_17 = arith.constant 0 : index
    %c0_18 = arith.constant 0 : index
    %31 = vector.load %arg8[%c0_17, %c0_18] : memref<1x32xf32, #tpu.memory_space<vmem>>, vector<1x32xf32>
    %c0_19 = arith.constant 0 : index
    %c0_20 = arith.constant 0 : index
    %32 = vector.load %arg9[%c0_19, %c0_20] : memref<1x32xf32, #tpu.memory_space<vmem>>, vector<1x32xf32>
    %cst_21 = arith.constant dense<0.000000e+00> : vector<8xf32>
    %33 = vector.multi_reduction <add>, %24, %cst_21 [1] : vector<8x32xf32> to vector<8xf32>
    %34 = vector.shape_cast %33 : vector<8xf32> to vector<8x1xf32>
    %cst_22 = arith.constant 3.200000e+01 : f32
    %35 = vector.broadcast %cst_22 : f32 to vector<8x1xf32>
    %36 = arith.divf %34, %35 : vector<8x1xf32>
    %37 = vector.broadcast %36 : vector<8x1xf32> to vector<8x32xf32>
    %38 = arith.subf %24, %37 : vector<8x32xf32>
    %39 = arith.mulf %38, %38 : vector<8x32xf32>
    %cst_23 = arith.constant dense<0.000000e+00> : vector<8xf32>
    %40 = vector.multi_reduction <add>, %39, %cst_23 [1] : vector<8x32xf32> to vector<8xf32>
    %41 = vector.shape_cast %40 : vector<8xf32> to vector<8x1xf32>
    %cst_24 = arith.constant 3.200000e+01 : f32
    %42 = vector.broadcast %cst_24 : f32 to vector<8x1xf32>
    %43 = arith.divf %41, %42 : vector<8x1xf32>
    %44 = vector.broadcast %36 : vector<8x1xf32> to vector<8x32xf32>
    %45 = arith.subf %24, %44 : vector<8x32xf32>
    %cst_25 = arith.constant 9.99999996E-13 : f32
    %46 = vector.broadcast %cst_25 : f32 to vector<8x1xf32>
    %47 = arith.addf %43, %46 : vector<8x1xf32>
    %48 = math.rsqrt %47 : vector<8x1xf32>
    %49 = vector.broadcast %48 : vector<8x1xf32> to vector<8x32xf32>
    %50 = arith.mulf %45, %49 : vector<8x32xf32>
    %51 = vector.broadcast %31 : vector<1x32xf32> to vector<8x32xf32>
    %52 = arith.mulf %50, %51 : vector<8x32xf32>
    %53 = vector.broadcast %32 : vector<1x32xf32> to vector<8x32xf32>
    %54 = arith.addf %52, %53 : vector<8x32xf32>
    %c0_26 = arith.constant 0 : index
    %c0_27 = arith.constant 0 : index
    %55 = vector.load %arg10[%c0_26, %c0_27] : memref<32x96xf32, #tpu.memory_space<vmem>>, vector<32x96xf32>
    %cst_28 = arith.constant dense<0.000000e+00> : vector<8x96xf32>
    %56 = tpu.matmul %54, %55, %cst_28 {dimension_numbers = #tpu.dot_dimension_numbers<[1], [0], [0], [1], [0, 0, 1, 1], [], []>} : vector<8x32xf32>, vector<32x96xf32>, vector<8x96xf32> -> vector<8x96xf32>
    %c0_29 = arith.constant 0 : index
    %c0_30 = arith.constant 0 : index
    %57 = vector.load %arg11[%c0_29, %c0_30] : memref<1x96xf32, #tpu.memory_space<vmem>>, vector<1x96xf32>
    %58 = vector.broadcast %57 : vector<1x96xf32> to vector<8x96xf32>
    %59 = arith.addf %56, %58 : vector<8x96xf32>
    %60 = vector.extract_strided_slice %59 {offsets = [0, 0], sizes = [8, 16], strides = [1, 1]} : vector<8x96xf32> to vector<8x16xf32>
    %61 = vector.extract_strided_slice %59 {offsets = [0, 32], sizes = [8, 16], strides = [1, 1]} : vector<8x96xf32> to vector<8x16xf32>
    %62 = vector.extract_strided_slice %59 {offsets = [0, 64], sizes = [8, 16], strides = [1, 1]} : vector<8x96xf32> to vector<8x16xf32>
    %63 = tpu.transpose %61, [1, 0] : vector<8x16xf32> -> vector<16x8xf32>
    %cst_31 = arith.constant dense<0.000000e+00> : vector<8x8xf32>
    %64 = tpu.matmul %60, %63, %cst_31 {dimension_numbers = #tpu.dot_dimension_numbers<[1], [0], [0], [1], [0, 0, 1, 1], [], []>} : vector<8x16xf32>, vector<16x8xf32>, vector<8x8xf32> -> vector<8x8xf32>
    %cst_32 = arith.constant 2.500000e-01 : f32
    %65 = vector.broadcast %cst_32 : f32 to vector<8x8xf32>
    %66 = arith.mulf %64, %65 : vector<8x8xf32>
    %67 = vector.broadcast %30 : vector<1x8xf32> to vector<8x8xf32>
    %68 = arith.addf %66, %67 : vector<8x8xf32>
    %cst_33 = arith.constant dense<0xFF800000> : vector<8xf32>
    %69 = vector.multi_reduction <maximumf>, %68, %cst_33 [1] : vector<8x8xf32> to vector<8xf32>
    %70 = vector.shape_cast %69 : vector<8xf32> to vector<8x1xf32>
    %71 = vector.broadcast %70 : vector<8x1xf32> to vector<8x8xf32>
    %72 = arith.subf %68, %71 : vector<8x8xf32>
    %73 = math.exp %72 : vector<8x8xf32>
    %cst_34 = arith.constant dense<0.000000e+00> : vector<8xf32>
    %74 = vector.multi_reduction <add>, %73, %cst_34 [1] : vector<8x8xf32> to vector<8xf32>
    %75 = vector.shape_cast %74 : vector<8xf32> to vector<8x1xf32>
    %76 = tpu.reciprocal %75 {approx = true} : vector<8x1xf32> -> vector<8x1xf32>
    %77 = vector.broadcast %76 : vector<8x1xf32> to vector<8x8xf32>
    %78 = arith.mulf %73, %77 : vector<8x8xf32>
    %cst_35 = arith.constant dense<0.000000e+00> : vector<8x16xf32>
    %79 = tpu.matmul %78, %62, %cst_35 {dimension_numbers = #tpu.dot_dimension_numbers<[1], [0], [0], [1], [0, 0, 1, 1], [], []>} : vector<8x8xf32>, vector<8x16xf32>, vector<8x16xf32> -> vector<8x16xf32>
    %c0_36 = arith.constant 0 : index
    %c0_37 = arith.constant 0 : index
    %80 = vector.load %arg12[%c0_36, %c0_37] : memref<32x32xf32, #tpu.memory_space<vmem>>, vector<16x32xf32>
    %cst_38 = arith.constant dense<0.000000e+00> : vector<8x32xf32>
    %81 = tpu.matmul %79, %80, %cst_38 {dimension_numbers = #tpu.dot_dimension_numbers<[1], [0], [0], [1], [0, 0, 1, 1], [], []>} : vector<8x16xf32>, vector<16x32xf32>, vector<8x32xf32> -> vector<8x32xf32>
    %82 = vector.extract_strided_slice %59 {offsets = [0, 16], sizes = [8, 16], strides = [1, 1]} : vector<8x96xf32> to vector<8x16xf32>
    %83 = vector.extract_strided_slice %59 {offsets = [0, 48], sizes = [8, 16], strides = [1, 1]} : vector<8x96xf32> to vector<8x16xf32>
    %84 = vector.extract_strided_slice %59 {offsets = [0, 80], sizes = [8, 16], strides = [1, 1]} : vector<8x96xf32> to vector<8x16xf32>
    %85 = tpu.transpose %83, [1, 0] : vector<8x16xf32> -> vector<16x8xf32>
    %cst_39 = arith.constant dense<0.000000e+00> : vector<8x8xf32>
    %86 = tpu.matmul %82, %85, %cst_39 {dimension_numbers = #tpu.dot_dimension_numbers<[1], [0], [0], [1], [0, 0, 1, 1], [], []>} : vector<8x16xf32>, vector<16x8xf32>, vector<8x8xf32> -> vector<8x8xf32>
    %cst_40 = arith.constant 2.500000e-01 : f32
    %87 = vector.broadcast %cst_40 : f32 to vector<8x8xf32>
    %88 = arith.mulf %86, %87 : vector<8x8xf32>
    %89 = vector.broadcast %30 : vector<1x8xf32> to vector<8x8xf32>
    %90 = arith.addf %88, %89 : vector<8x8xf32>
    %cst_41 = arith.constant dense<0xFF800000> : vector<8xf32>
    %91 = vector.multi_reduction <maximumf>, %90, %cst_41 [1] : vector<8x8xf32> to vector<8xf32>
    %92 = vector.shape_cast %91 : vector<8xf32> to vector<8x1xf32>
    %93 = vector.broadcast %92 : vector<8x1xf32> to vector<8x8xf32>
    %94 = arith.subf %90, %93 : vector<8x8xf32>
    %95 = math.exp %94 : vector<8x8xf32>
    %cst_42 = arith.constant dense<0.000000e+00> : vector<8xf32>
    %96 = vector.multi_reduction <add>, %95, %cst_42 [1] : vector<8x8xf32> to vector<8xf32>
    %97 = vector.shape_cast %96 : vector<8xf32> to vector<8x1xf32>
    %98 = tpu.reciprocal %97 {approx = true} : vector<8x1xf32> -> vector<8x1xf32>
    %99 = vector.broadcast %98 : vector<8x1xf32> to vector<8x8xf32>
    %100 = arith.mulf %95, %99 : vector<8x8xf32>
    %cst_43 = arith.constant dense<0.000000e+00> : vector<8x16xf32>
    %101 = tpu.matmul %100, %84, %cst_43 {dimension_numbers = #tpu.dot_dimension_numbers<[1], [0], [0], [1], [0, 0, 1, 1], [], []>} : vector<8x8xf32>, vector<8x16xf32>, vector<8x16xf32> -> vector<8x16xf32>
    %c16 = arith.constant 16 : index
    %c0_44 = arith.constant 0 : index
    %102 = vector.load %arg12[%c16, %c0_44] : memref<32x32xf32, #tpu.memory_space<vmem>>, vector<16x32xf32>
    %cst_45 = arith.constant dense<0.000000e+00> : vector<8x32xf32>
    %103 = tpu.matmul %101, %102, %cst_45 {dimension_numbers = #tpu.dot_dimension_numbers<[1], [0], [0], [1], [0, 0, 1, 1], [], []>} : vector<8x16xf32>, vector<16x32xf32>, vector<8x32xf32> -> vector<8x32xf32>
    %104 = arith.addf %81, %103 : vector<8x32xf32>
    %c0_46 = arith.constant 0 : index
    %c0_47 = arith.constant 0 : index
    %105 = vector.load %arg13[%c0_46, %c0_47] : memref<1x32xf32, #tpu.memory_space<vmem>>, vector<1x32xf32>
    %106 = vector.broadcast %105 : vector<1x32xf32> to vector<8x32xf32>
    %107 = arith.addf %104, %106 : vector<8x32xf32>
    %108 = arith.addf %54, %107 : vector<8x32xf32>
    %c0_48 = arith.constant 0 : index
    %c0_49 = arith.constant 0 : index
    %109 = vector.load %arg14[%c0_48, %c0_49] : memref<1x32xf32, #tpu.memory_space<vmem>>, vector<1x32xf32>
    %c0_50 = arith.constant 0 : index
    %c0_51 = arith.constant 0 : index
    %110 = vector.load %arg15[%c0_50, %c0_51] : memref<1x32xf32, #tpu.memory_space<vmem>>, vector<1x32xf32>
    %cst_52 = arith.constant dense<0.000000e+00> : vector<8xf32>
    %111 = vector.multi_reduction <add>, %108, %cst_52 [1] : vector<8x32xf32> to vector<8xf32>
    %112 = vector.shape_cast %111 : vector<8xf32> to vector<8x1xf32>
    %cst_53 = arith.constant 3.200000e+01 : f32
    %113 = vector.broadcast %cst_53 : f32 to vector<8x1xf32>
    %114 = arith.divf %112, %113 : vector<8x1xf32>
    %115 = vector.broadcast %114 : vector<8x1xf32> to vector<8x32xf32>
    %116 = arith.subf %108, %115 : vector<8x32xf32>
    %117 = arith.mulf %116, %116 : vector<8x32xf32>
    %cst_54 = arith.constant dense<0.000000e+00> : vector<8xf32>
    %118 = vector.multi_reduction <add>, %117, %cst_54 [1] : vector<8x32xf32> to vector<8xf32>
    %119 = vector.shape_cast %118 : vector<8xf32> to vector<8x1xf32>
    %cst_55 = arith.constant 3.200000e+01 : f32
    %120 = vector.broadcast %cst_55 : f32 to vector<8x1xf32>
    %121 = arith.divf %119, %120 : vector<8x1xf32>
    %122 = vector.broadcast %114 : vector<8x1xf32> to vector<8x32xf32>
    %123 = arith.subf %108, %122 : vector<8x32xf32>
    %cst_56 = arith.constant 9.99999996E-13 : f32
    %124 = vector.broadcast %cst_56 : f32 to vector<8x1xf32>
    %125 = arith.addf %121, %124 : vector<8x1xf32>
    %126 = math.rsqrt %125 : vector<8x1xf32>
    %127 = vector.broadcast %126 : vector<8x1xf32> to vector<8x32xf32>
    %128 = arith.mulf %123, %127 : vector<8x32xf32>
    %129 = vector.broadcast %109 : vector<1x32xf32> to vector<8x32xf32>
    %130 = arith.mulf %128, %129 : vector<8x32xf32>
    %131 = vector.broadcast %110 : vector<1x32xf32> to vector<8x32xf32>
    %132 = arith.addf %130, %131 : vector<8x32xf32>
    %c0_57 = arith.constant 0 : index
    %c0_58 = arith.constant 0 : index
    %133 = vector.load %arg16[%c0_57, %c0_58] : memref<32x64xf32, #tpu.memory_space<vmem>>, vector<32x64xf32>
    %cst_59 = arith.constant dense<0.000000e+00> : vector<8x64xf32>
    %134 = tpu.matmul %132, %133, %cst_59 {dimension_numbers = #tpu.dot_dimension_numbers<[1], [0], [0], [1], [0, 0, 1, 1], [], []>} : vector<8x32xf32>, vector<32x64xf32>, vector<8x64xf32> -> vector<8x64xf32>
    %c0_60 = arith.constant 0 : index
    %c0_61 = arith.constant 0 : index
    %135 = vector.load %arg17[%c0_60, %c0_61] : memref<1x64xf32, #tpu.memory_space<vmem>>, vector<1x64xf32>
    %136 = vector.broadcast %135 : vector<1x64xf32> to vector<8x64xf32>
    %137 = arith.addf %134, %136 : vector<8x64xf32>
    %138 = arith.mulf %137, %137 : vector<8x64xf32>
    %139 = arith.mulf %137, %138 : vector<8x64xf32>
    %cst_62 = arith.constant 4.471500e-02 : f32
    %140 = vector.broadcast %cst_62 : f32 to vector<8x64xf32>
    %141 = arith.mulf %140, %139 : vector<8x64xf32>
    %142 = arith.addf %137, %141 : vector<8x64xf32>
    %cst_63 = arith.constant 0.797884583 : f32
    %143 = vector.broadcast %cst_63 : f32 to vector<8x64xf32>
    %144 = arith.mulf %143, %142 : vector<8x64xf32>
    %145 = math.tanh %144 : vector<8x64xf32>
    %cst_64 = arith.constant 1.000000e+00 : f32
    %146 = vector.broadcast %cst_64 : f32 to vector<8x64xf32>
    %147 = arith.addf %146, %145 : vector<8x64xf32>
    %cst_65 = arith.constant 5.000000e-01 : f32
    %148 = vector.broadcast %cst_65 : f32 to vector<8x64xf32>
    %149 = arith.mulf %148, %147 : vector<8x64xf32>
    %150 = arith.mulf %137, %149 : vector<8x64xf32>
    %c0_66 = arith.constant 0 : index
    %c0_67 = arith.constant 0 : index
    %151 = vector.load %arg18[%c0_66, %c0_67] : memref<64x32xf32, #tpu.memory_space<vmem>>, vector<64x32xf32>
    %cst_68 = arith.constant dense<0.000000e+00> : vector<8x32xf32>
    %152 = tpu.matmul %150, %151, %cst_68 {dimension_numbers = #tpu.dot_dimension_numbers<[1], [0], [0], [1], [0, 0, 1, 1], [], []>} : vector<8x64xf32>, vector<64x32xf32>, vector<8x32xf32> -> vector<8x32xf32>
    %c0_69 = arith.constant 0 : index
    %c0_70 = arith.constant 0 : index
    %153 = vector.load %arg19[%c0_69, %c0_70] : memref<1x32xf32, #tpu.memory_space<vmem>>, vector<1x32xf32>
    %154 = vector.broadcast %153 : vector<1x32xf32> to vector<8x32xf32>
    %155 = arith.addf %152, %154 : vector<8x32xf32>
    %156 = arith.addf %132, %155 : vector<8x32xf32>
    %c0_71 = arith.constant 0 : index
    %c0_72 = arith.constant 0 : index
    %157 = vector.load %arg20[%c0_71, %c0_72] : memref<1x32xf32, #tpu.memory_space<vmem>>, vector<1x32xf32>
    %c0_73 = arith.constant 0 : index
    %c0_74 = arith.constant 0 : index
    %158 = vector.load %arg21[%c0_73, %c0_74] : memref<1x32xf32, #tpu.memory_space<vmem>>, vector<1x32xf32>
    %cst_75 = arith.constant dense<0.000000e+00> : vector<8xf32>
    %159 = vector.multi_reduction <add>, %156, %cst_75 [1] : vector<8x32xf32> to vector<8xf32>
    %160 = vector.shape_cast %159 : vector<8xf32> to vector<8x1xf32>
    %cst_76 = arith.constant 3.200000e+01 : f32
    %161 = vector.broadcast %cst_76 : f32 to vector<8x1xf32>
    %162 = arith.divf %160, %161 : vector<8x1xf32>
    %163 = vector.broadcast %162 : vector<8x1xf32> to vector<8x32xf32>
    %164 = arith.subf %156, %163 : vector<8x32xf32>
    %165 = arith.mulf %164, %164 : vector<8x32xf32>
    %cst_77 = arith.constant dense<0.000000e+00> : vector<8xf32>
    %166 = vector.multi_reduction <add>, %165, %cst_77 [1] : vector<8x32xf32> to vector<8xf32>
    %167 = vector.shape_cast %166 : vector<8xf32> to vector<8x1xf32>
    %cst_78 = arith.constant 3.200000e+01 : f32
    %168 = vector.broadcast %cst_78 : f32 to vector<8x1xf32>
    %169 = arith.divf %167, %168 : vector<8x1xf32>
    %170 = vector.broadcast %162 : vector<8x1xf32> to vector<8x32xf32>
    %171 = arith.subf %156, %170 : vector<8x32xf32>
    %cst_79 = arith.constant 9.99999996E-13 : f32
    %172 = vector.broadcast %cst_79 : f32 to vector<8x1xf32>
    %173 = arith.addf %169, %172 : vector<8x1xf32>
    %174 = math.rsqrt %173 : vector<8x1xf32>
    %175 = vector.broadcast %174 : vector<8x1xf32> to vector<8x32xf32>
    %176 = arith.mulf %171, %175 : vector<8x32xf32>
    %177 = vector.broadcast %157 : vector<1x32xf32> to vector<8x32xf32>
    %178 = arith.mulf %176, %177 : vector<8x32xf32>
    %179 = vector.broadcast %158 : vector<1x32xf32> to vector<8x32xf32>
    %180 = arith.addf %178, %179 : vector<8x32xf32>
    %c0_80 = arith.constant 0 : index
    %c0_81 = arith.constant 0 : index
    %181 = vector.load %arg22[%c0_80, %c0_81] : memref<32x28xf32, #tpu.memory_space<vmem>>, vector<32x28xf32>
    %cst_82 = arith.constant dense<0.000000e+00> : vector<8x28xf32>
    %182 = tpu.matmul %180, %181, %cst_82 {dimension_numbers = #tpu.dot_dimension_numbers<[1], [0], [0], [1], [0, 0, 1, 1], [], []>} : vector<8x32xf32>, vector<32x28xf32>, vector<8x28xf32> -> vector<8x28xf32>
    %c0_83 = arith.constant 0 : index
    %c0_84 = arith.constant 0 : index
    %183 = vector.load %arg23[%c0_83, %c0_84] : memref<1x28xf32, #tpu.memory_space<vmem>>, vector<1x28xf32>
    %184 = vector.broadcast %183 : vector<1x28xf32> to vector<8x28xf32>
    %185 = arith.addf %182, %184 : vector<8x28xf32>
    %186 = arith.index_cast %arg0 : i32 to index
    %187 = memref.load %arg1[%186] : memref<2xi32, #tpu.memory_space<smem>>
    %c2_i32 = arith.constant 2 : i32
    %188 = arith.subi %187, %c2_i32 : i32
    %189 = tpu.iota {dimensions = array<i32: 0>} : vector<6x8xi32>
    %190 = tpu.iota {dimensions = array<i32: 1>} : vector<6x8xi32>
    %191 = vector.broadcast %188 : i32 to vector<6x8xi32>
    %192 = arith.cmpi slt, %189, %191 : vector<6x8xi32>
    %c1_i32 = arith.constant 1 : i32
    %193 = vector.broadcast %c1_i32 : i32 to vector<6x8xi32>
    %194 = arith.addi %189, %193 : vector<6x8xi32>
    %c2_i32_85 = arith.constant 2 : i32
    %195 = vector.broadcast %c2_i32_85 : i32 to vector<6x8xi32>
    %196 = arith.addi %189, %195 : vector<6x8xi32>
    %197 = arith.select %192, %194, %196 : vector<6x8xi1>, vector<6x8xi32>
    %198 = arith.cmpi eq, %190, %197 : vector<6x8xi32>
    %199 = arith.extui %198 : vector<6x8xi1> to vector<6x8xi32>
    %200 = arith.sitofp %199 : vector<6x8xi32> to vector<6x8xf32>
    %cst_86 = arith.constant dense<0.000000e+00> : vector<6x28xf32>
    %201 = tpu.matmul %200, %185, %cst_86 {dimension_numbers = #tpu.dot_dimension_numbers<[1], [0], [0], [1], [0, 0, 1, 1], [], []>} : vector<6x8xf32>, vector<8x28xf32>, vector<6x28xf32> -> vector<6x28xf32>
    %202 = vector.shape_cast %201 : vector<6x28xf32> to vector<1x6x28xf32>
    %c0_87 = arith.constant 0 : index
    %c0_88 = arith.constant 0 : index
    %c0_89 = arith.constant 0 : index
    %203 = vector.load %arg24[%c0_87, %c0_88, %c0_89] : memref<1x6x28xf32, #tpu.memory_space<vmem>>, vector<1x6x28xf32>
    tpu.vector_store %arg24[%c0_87, %c0_88, %c0_89], %202 {strides = array<i32>} : memref<1x6x28xf32, #tpu.memory_space<vmem>>, vector<1x6x28xf32>,
    %204 = vector.broadcast %26 : vector<1x8xf32> to vector<6x8xf32>
    %205 = arith.mulf %200, %204 : vector<6x8xf32>
    %cst_90 = arith.constant dense<0.000000e+00> : vector<6xf32>
    %206 = vector.multi_reduction <add>, %205, %cst_90 [1] : vector<6x8xf32> to vector<6xf32>
    %207 = vector.shape_cast %206 : vector<6xf32> to vector<6x1xf32>
    %208 = vector.shape_cast %207 : vector<6x1xf32> to vector<1x6x1xf32>
    %c0_91 = arith.constant 0 : index
    %c0_92 = arith.constant 0 : index
    %c0_93 = arith.constant 0 : index
    %209 = vector.load %arg25[%c0_91, %c0_92, %c0_93] : memref<1x6x1xf32, #tpu.memory_space<vmem>>, vector<1x6x1xf32>
    tpu.vector_store %arg25[%c0_91, %c0_92, %c0_93], %208 {strides = array<i32>} : memref<1x6x1xf32, #tpu.memory_space<vmem>>, vector<1x6x1xf32>,
    return
  }
  func.func @transform_0(%arg0: i32, %arg1: memref<2xi32, #tpu.memory_space<smem>>) -> (i32, i32, i32) {
    %c0_i32 = arith.constant 0 : i32
    %c0_i32_0 = arith.constant 0 : i32
    %c0_i32_1 = arith.constant 0 : i32
    return %arg0, %c0_i32, %c0_i32_0 : i32, i32, i32
  }
  func.func @transform_1(%arg0: i32, %arg1: memref<2xi32, #tpu.memory_space<smem>>) -> (i32, i32, i32) {
    %c0_i32 = arith.constant 0 : i32
    %c0_i32_0 = arith.constant 0 : i32
    %c0_i32_1 = arith.constant 0 : i32
    return %arg0, %c0_i32, %c0_i32_0 : i32, i32, i32
  }
  func.func @transform_2(%arg0: i32, %arg1: memref<2xi32, #tpu.memory_space<smem>>) -> (i32, i32, i32) {
    %c0_i32 = arith.constant 0 : i32
    %c0_i32_0 = arith.constant 0 : i32
    %c0_i32_1 = arith.constant 0 : i32
    return %arg0, %c0_i32, %c0_i32_0 : i32, i32, i32
  }
  func.func @transform_3(%arg0: i32, %arg1: memref<2xi32, #tpu.memory_space<smem>>) -> (i32, i32) {
    %c0_i32 = arith.constant 0 : i32
    %c0_i32_0 = arith.constant 0 : i32
    %c0_i32_1 = arith.constant 0 : i32
    return %c0_i32, %c0_i32_0 : i32, i32
  }
  func.func @transform_4(%arg0: i32, %arg1: memref<2xi32, #tpu.memory_space<smem>>) -> (i32, i32) {
    %c0_i32 = arith.constant 0 : i32
    %c0_i32_0 = arith.constant 0 : i32
    %c0_i32_1 = arith.constant 0 : i32
    return %c0_i32, %c0_i32_0 : i32, i32
  }
  func.func @transform_5(%arg0: i32, %arg1: memref<2xi32, #tpu.memory_space<smem>>) -> (i32, i32) {
    %c0_i32 = arith.constant 0 : i32
    %c0_i32_0 = arith.constant 0 : i32
    %c0_i32_1 = arith.constant 0 : i32
    return %c0_i32, %c0_i32_0 : i32, i32
  }
  func.func @transform_6(%arg0: i32, %arg1: memref<2xi32, #tpu.memory_space<smem>>) -> (i32, i32) {
    %c0_i32 = arith.constant 0 : i32
    %c0_i32_0 = arith.constant 0 : i32
    %c0_i32_1 = arith.constant 0 : i32
    return %c0_i32, %c0_i32_0 : i32, i32
  }
  func.func @transform_7(%arg0: i32, %arg1: memref<2xi32, #tpu.memory_space<smem>>) -> (i32, i32) {
    %c0_i32 = arith.constant 0 : i32
    %c0_i32_0 = arith.constant 0 : i32
    %c0_i32_1 = arith.constant 0 : i32
    return %c0_i32, %c0_i32_0 : i32, i32
  }
  func.func @transform_8(%arg0: i32, %arg1: memref<2xi32, #tpu.memory_space<smem>>) -> (i32, i32) {
    %c0_i32 = arith.constant 0 : i32
    %c0_i32_0 = arith.constant 0 : i32
    %c0_i32_1 = arith.constant 0 : i32
    return %c0_i32, %c0_i32_0 : i32, i32
  }
  func.func @transform_9(%arg0: i32, %arg1: memref<2xi32, #tpu.memory_space<smem>>) -> (i32, i32) {
    %c0_i32 = arith.constant 0 : i32
    %c0_i32_0 = arith.constant 0 : i32
    %c0_i32_1 = arith.constant 0 : i32
    return %c0_i32, %c0_i32_0 : i32, i32
  }
  func.func @transform_10(%arg0: i32, %arg1: memref<2xi32, #tpu.memory_space<smem>>) -> (i32, i32) {
    %c0_i32 = arith.constant 0 : i32
    %c0_i32_0 = arith.constant 0 : i32
    %c0_i32_1 = arith.constant 0 : i32
    return %c0_i32, %c0_i32_0 : i32, i32
  }
  func.func @transform_11(%arg0: i32, %arg1: memref<2xi32, #tpu.memory_space<smem>>) -> (i32, i32) {
    %c0_i32 = arith.constant 0 : i32
    %c0_i32_0 = arith.constant 0 : i32
    %c0_i32_1 = arith.constant 0 : i32
    return %c0_i32, %c0_i32_0 : i32, i32
  }
  func.func @transform_12(%arg0: i32, %arg1: memref<2xi32, #tpu.memory_space<smem>>) -> (i32, i32) {
    %c0_i32 = arith.constant 0 : i32
    %c0_i32_0 = arith.constant 0 : i32
    %c0_i32_1 = arith.constant 0 : i32
    return %c0_i32, %c0_i32_0 : i32, i32
  }
  func.func @transform_13(%arg0: i32, %arg1: memref<2xi32, #tpu.memory_space<smem>>) -> (i32, i32) {
    %c0_i32 = arith.constant 0 : i32
    %c0_i32_0 = arith.constant 0 : i32
    %c0_i32_1 = arith.constant 0 : i32
    return %c0_i32, %c0_i32_0 : i32, i32
  }
  func.func @transform_14(%arg0: i32, %arg1: memref<2xi32, #tpu.memory_space<smem>>) -> (i32, i32) {
    %c0_i32 = arith.constant 0 : i32
    %c0_i32_0 = arith.constant 0 : i32
    %c0_i32_1 = arith.constant 0 : i32
    return %c0_i32, %c0_i32_0 : i32, i32
  }
  func.func @transform_15(%arg0: i32, %arg1: memref<2xi32, #tpu.memory_space<smem>>) -> (i32, i32) {
    %c0_i32 = arith.constant 0 : i32
    %c0_i32_0 = arith.constant 0 : i32
    %c0_i32_1 = arith.constant 0 : i32
    return %c0_i32, %c0_i32_0 : i32, i32
  }
  func.func @transform_16(%arg0: i32, %arg1: memref<2xi32, #tpu.memory_space<smem>>) -> (i32, i32) {
    %c0_i32 = arith.constant 0 : i32
    %c0_i32_0 = arith.constant 0 : i32
    %c0_i32_1 = arith.constant 0 : i32
    return %c0_i32, %c0_i32_0 : i32, i32
  }
  func.func @transform_17(%arg0: i32, %arg1: memref<2xi32, #tpu.memory_space<smem>>) -> (i32, i32) {
    %c0_i32 = arith.constant 0 : i32
    %c0_i32_0 = arith.constant 0 : i32
    %c0_i32_1 = arith.constant 0 : i32
    return %c0_i32, %c0_i32_0 : i32, i32
  }
  func.func @transform_18(%arg0: i32, %arg1: memref<2xi32, #tpu.memory_space<smem>>) -> (i32, i32) {
    %c0_i32 = arith.constant 0 : i32
    %c0_i32_0 = arith.constant 0 : i32
    %c0_i32_1 = arith.constant 0 : i32
    return %c0_i32, %c0_i32_0 : i32, i32
  }
  func.func @transform_19(%arg0: i32, %arg1: memref<2xi32, #tpu.memory_space<smem>>) -> (i32, i32) {
    %c0_i32 = arith.constant 0 : i32
    %c0_i32_0 = arith.constant 0 : i32
    %c0_i32_1 = arith.constant 0 : i32
    return %c0_i32, %c0_i32_0 : i32, i32
  }
  func.func @transform_20(%arg0: i32, %arg1: memref<2xi32, #tpu.memory_space<smem>>) -> (i32, i32) {
    %c0_i32 = arith.constant 0 : i32
    %c0_i32_0 = arith.constant 0 : i32
    %c0_i32_1 = arith.constant 0 : i32
    return %c0_i32, %c0_i32_0 : i32, i32
  }
  func.func @transform_21(%arg0: i32, %arg1: memref<2xi32, #tpu.memory_space<smem>>) -> (i32, i32) {
    %c0_i32 = arith.constant 0 : i32
    %c0_i32_0 = arith.constant 0 : i32
    %c0_i32_1 = arith.constant 0 : i32
    return %c0_i32, %c0_i32_0 : i32, i32
  }
  func.func @transform_22(%arg0: i32, %arg1: memref<2xi32, #tpu.memory_space<smem>>) -> (i32, i32, i32) {
    %c0_i32 = arith.constant 0 : i32
    %c0_i32_0 = arith.constant 0 : i32
    %c0_i32_1 = arith.constant 0 : i32
    return %arg0, %c0_i32, %c0_i32_0 : i32, i32, i32
  }
  func.func @transform_23(%arg0: i32, %arg1: memref<2xi32, #tpu.memory_space<smem>>) -> (i32, i32, i32) {
    %c0_i32 = arith.constant 0 : i32
    %c0_i32_0 = arith.constant 0 : i32
    %c0_i32_1 = arith.constant 0 : i32
    return %arg0, %c0_i32, %c0_i32_0 : i32, i32, i32
  }
}

</mosaic_0001>

<bundles_post_ra>
// kernel: ner1_forward.1
= control target key start
LH: loop header
LB: loop body
LE: loop exit
PB: predicated region body
PF: predicated region fallthrough
CT: control target
= control target key end

     0   :  { %s2784_s0 = inlined_call_operand.vmem [shape: s32[2], index: 0, kind: input, shape index: {}]   ;;  %s2785_s1 = inlined_call_operand.vmem [shape: s32[2,8,1], index: 1, kind: input, shape index: {}]   ;;  %s2786_s2 = inlined_call_operand.vmem [shape: s32[2,8,1], index: 2, kind: input, shape index: {}]   ;;  %s2787_s3 = inlined_call_operand.vmem [shape: f32[2,1,8], index: 3, kind: input, shape index: {}]   ;;  %s2788_s4 = inlined_call_operand.vmem [shape: f32[100,32], index: 4, kind: input, shape index: {}]   ;;  %s2789_s5 = inlined_call_operand.vmem [shape: f32[2,32], index: 5, kind: input, shape index: {}]   ;;  %s2790_s6 = inlined_call_operand.vmem [shape: f32[8,32], index: 6, kind: input, shape index: {}]   ;;  %s2791_s7 = inlined_call_operand.vmem [shape: f32[1,32], index: 7, kind: input, shape index: {}]   ;;  %s2792_s8 = inlined_call_operand.vmem [shape: f32[1,32], index: 8, kind: input, shape index: {}]   ;;  %s2793_s9 = inlined_call_operand.vmem [shape: f32[32,96], index: 9, kind: input, shape index: {}]   ;;  %s2794_s10 = inlined_call_operand.vmem [shape: f32[1,96], index: 10, kind: input, shape index: {}]   ;;  %s2795_s11 = inlined_call_operand.vmem [shape: f32[32,32], index: 11, kind: input, shape index: {}]   ;;  %s2796_s12 = inlined_call_operand.vmem [shape: f32[1,32], index: 12, kind: input, shape index: {}]   ;;  %s2797_s13 = inlined_call_operand.vmem [shape: f32[1,32], index: 13, kind: input, shape index: {}]   ;;  %s2798_s14 = inlined_call_operand.vmem [shape: f32[1,32], index: 14, kind: input, shape index: {}]   ;;  %s2799_s15 = inlined_call_operand.vmem [shape: f32[32,64], index: 15, kind: input, shape index: {}]   ;;  %s2800_s16 = inlined_call_operand.vmem [shape: f32[1,64], index: 16, kind: input, shape index: {}]   ;;  %s2801_s17 = inlined_call_operand.vmem [shape: f32[64,32], index: 17, kind: input, shape index: {}]   ;;  %s2802_s18 = inlined_call_operand.vmem [shape: f32[1,32], index: 18, kind: input, shape index: {}]   ;;  %s2803_s19 = inlined_call_operand.vmem [shape: f32[1,32], index: 19, kind: input, shape index: {}]   ;;  %s2804_s20 = inlined_call_operand.vmem [shape: f32[1,32], index: 20, kind: input, shape index: {}]   ;;  %s2805_s21 = inlined_call_operand.vmem [shape: f32[32,28], index: 21, kind: input, shape index: {}]   ;;  %s2806_s22 = inlined_call_operand.vmem [shape: f32[1,28], index: 22, kind: input, shape index: {}]   ;;  %s2807_s23 = inlined_call_operand.vmem [shape: f32[2,6,28], index: 23, kind: output, shape index: {0}]   ;;  %s2808_s24 = inlined_call_operand.vmem [shape: f32[2,6,1], index: 24, kind: output, shape index: {1}]  }
   0x1   :  { %2812 = sst [smem:[#allocation6_spill]] %s2784_s0 }
   0x2   :  { %2813 = sst [smem:[#allocation7_spill]] %s2785_s1  ;;  %s2822_s27 = sld [smem:[#allocation6_spill]] }
   0x3   :  { %2814 = sst [smem:[#allocation8_spill]] %s2786_s2 }
   0x4   :  { %2815 = sst [smem:[#allocation9_spill]] %s2787_s3 }
   0x5   :  { %2816 = sst [smem:[#allocation10_spill]] %s2788_s4 }
   0x6   :  { %2817 = sst [smem:[#allocation11_spill]] %s2789_s5 }
   0x7   :  { %2818 = sst [smem:[#allocation12_spill]] %s2790_s6 }
   0x8   :  { %2819 = sst [smem:[#allocation13_spill]] %s2791_s7 }
   0x9   :  { %2820 = sst [smem:[#allocation14_spill]] %s2792_s8 }
   0xa   :  { %2821 = sst [smem:[#allocation15_spill]] %s2802_s18  ;;  %s30_s18 = sshll.u32 %s2822_s27, 4  ;;  %s31_s18 = int_to_ptr.vmem [resolvable:$true] %s30_s18 }
   0xb   :  { %s2328_s28 = scalar_lea.vmem %s31_s18, 16  ;;  %p2333_p1 = scmp.lt.s32.totalorder %s31_s18, %s31_s18 }
   0xc   :  { %p2329_p0 = scmp.ne.s32.totalorder %s31_s18, %s2328_s28  ;;  %p2334_p2 = scmp.lt.s32.totalorder %s2328_s28, %s2328_s28 }
   0xe   :  { %p2335_p3 = por %p2334_p2, %p2333_p1 }
  0x10   :  { %p2336_p4 = pnand %p2335_p3, %p2329_p0 }
  0x12   :  { %2339 = shalt.err (!%p2336_p4)  }
  0x13   :  { %s2350_s6 = smov [#allocation3]  }
  0x14   :  { %33 = dma.vmem_to_smem %s31_s18, 16, %s2350_s6, [#allocation2] }
  0x15   :  { %2344 = dma.done.wait [#allocation2], 16 }
  0x16   :  { %2345 = vsyncadd [#allocation2], 4294967280 }
  0x17   :  { %35 = sfence }
  0x18   :  { %s2488_s2 = smov 0  }
  0x19 LB: > { %2823 = sst [smem:[#allocation5_spill]] %s2348_s2  ;;  %s2494_s29 = sadd.s32 4294967295, %s2348_s2   ;;  %s2348_s2 = sphi %s2488_s2, %s41_s2  }
  0x1a   : > { %p2027_p5 = scmp.ge.s32.totalorder %s2348_s2, 1  ;;  %p663_p6 = scmp.lt.s32.totalorder %s2348_s2, 3 }
  0x1c   : > { %p664_p7 = pnand %p2027_p5, %p663_p6 }
  0x1d   : > { %p736_p8 = scmp.lt.s32.totalorder (!%p664_p7), %s2494_s29, 1  ;;  %s2824_s7 = sld [smem:[#allocation10_spill]] (!%p664_p7)  ;;  %v2351_v3 = vmov (!%p664_p7), 0   ;;  %v2352_v4 = vmov (!%p664_p7), 0.0|0.0   ;;  %vm2353_vm1 = vmmov (!%p664_p7), 0   ;;  %v2354_v16 = vmov (!%p664_p7), 0.0  }
  0x1e   : > { %667 = sbr.rel (%p664_p7) target bundleno = 4039 (0xfc7), region = 108  ;;  %2311 = vset.pattern.permute.xlu0 (!%p664_p7), %v2351_v3  ;;  %2239 = vmatprep.subr.bf16.mxu0 (!%p664_p7), %v2352_v4  ;;  %s2825_s3 = sld [smem:[#allocation8_spill]] (!%p664_p7)  ;;  %vm799_vm2 = vcmask (!%p664_p7), 1043456   ;;  %v757_v25 = vlaneseq (!%p664_p7)  ;;  %vm795_vm3 = vcmask (!%p664_p7), 818176   ;;  %vm880_vm6 = vcmask (!%p664_p7), 261120   ;;  %v909_v44 = vld [vmem:[%s2793_s9] sm:$0xff] (!%p664_p7) }
  0x1f   : > { %2257 = vmatprep.subr.bf16.mxu1 (!%p664_p7), %v2352_v4  ;;  %s2826_s1 = sld [smem:[#allocation7_spill]] (!%p664_p7)  ;;  %2145 = vmatprep.mubr.msk.f32.mxu0 (!%p664_p7), %vm2353_vm1, %v2354_v16  ;;  %s2829_s4 = sld [smem:[#allocation12_spill]] (!%p664_p7)  ;;  %v910_v45 = vld [vmem:[%s2793_s9 + $0x8] sm:$0xff] (!%p664_p7)  ;;  %v911_v46 = vld [vmem:[%s2793_s9 + $0x10] sm:$0xff] (!%p664_p7)  ;;  %v912_v48 = vld [vmem:[%s2793_s9 + $0x18] sm:$0xff] (!%p664_p7)  ;;  %vm996_vm7 = vcmask (!%p664_p7), 130048  }
  0x20   : > { %2156 = vmatprep.mubr.msk.f32.mxu1 (!%p664_p7), %vm2353_vm1, %v2354_v16  ;;  %v2565_v26 = vand.u32 (!%p664_p7), 127, %v757_v25  ;;  %v2258_v47 = vpack.c.bf16 (!%p664_p7), %v910_v45, %v909_v44  ;;  %v2261_v49 = vpack.c.bf16 (!%p664_p7), %v912_v48, %v911_v46  ;;  %s2831_s28 = sld [smem:[#allocation14_spill]] (!%p664_p7)  ;;  %v2039_v59 = vld [vmem:[%s2794_s10] ss:$0 sm:$0xff] (!%p664_p7)  ;;  %vm1079_vm8 = vcmask (!%p664_p7), 64512   ;;  %v1336_v44 = vld [vmem:[%s2795_s11 + $0x10] sm:$0xff] (!%p664_p7) }
  0x21   : > { %v1337_v45 = vld [vmem:[%s2795_s11 + $0x18] sm:$0xff] (!%p664_p7)  ;;  %vm1630_vm9 = vcmask (!%p664_p7), 523264   ;;  %vm1912_vm12 = vcmask (!%p664_p7), 62464   ;;  %vm1916_vm13 = vcmask (!%p664_p7), 5120   ;;  %vm1903_vm14 = vcmask (!%p664_p7), 226304  }
  0x22   : > { %2259 = vmatpush3.bf16.msra.mxu1 (!%p664_p7), %v2258_v47  ;;  %v2264_v47 = vpack.c.bf16 (!%p664_p7), %v1337_v45, %v1336_v44 }
  0x23   : > { %v765_v0 = vld [vmem:[%s2824_s7] sm:$0xff] (!%p664_p7)  ;;  %v766_v1 = vld [vmem:[%s2824_s7 + $0x8] sm:$0xff] (!%p664_p7)  ;;  %v767_v2 = vld [vmem:[%s2824_s7 + $0x10] sm:$0xff] (!%p664_p7)  ;;  %2260 = vmatprep.subr.bf16.mxu1 (!%p664_p7), %v2352_v4 }
  0x24   : > { %v2240_v5 = vpack.c.bf16 (!%p664_p7), %v766_v1, %v765_v0  ;;  %v768_v6 = vld [vmem:[%s2824_s7 + $0x18] sm:$0xff] (!%p664_p7)  ;;  %v769_v8 = vld [vmem:[%s2824_s7 + $0x20] sm:$0xff] (!%p664_p7)  ;;  %v770_v9 = vld [vmem:[%s2824_s7 + $0x28] sm:$0xff] (!%p664_p7)  ;;  %v2626_v1 = vshrl.u32 (!%p664_p7), %v757_v25, 7 }
  0x25   : > { %s2513_s5 = scalar_select %p736_p8, %s2494_s29, 1  ;;  %v2243_v7 = vpack.c.bf16 %v768_v6, %v767_v2  ;;  %v2246_v12 = vpack.c.bf16 %v770_v9, %v769_v8  ;;  %v771_v14 = vld [vmem:[%s2824_s7 + $0x30] sm:$0xff]  ;;  %v772_v15 = vld [vmem:[%s2824_s7 + $0x38] sm:$0xff]  ;;  %v773_v18 = vld [vmem:[%s2824_s7 + $0x40] sm:$0xff] }
  0x26   : > { %2241 = vmatpush3.bf16.msra.mxu0 %v2240_v5  ;;  %v2249_v17 = vpack.c.bf16 %v772_v15, %v771_v14  ;;  %v774_v19 = vld [vmem:[%s2824_s7 + $0x48] sm:$0xff]  ;;  %v775_v21 = vld [vmem:[%s2824_s7 + $0x50] sm:$0xff]  ;;  %v776_v22 = vld [vmem:[%s2824_s7 + $0x58] sm:$0xff]  ;;  %2262 = vmatpush3.bf16.msra.mxu1 %v2261_v49  ;;  %v1075_v5 = vsub.s32 0, %v2626_v1 }
  0x27   : > { %s2517_s26 = sshll.u32 %s2513_s5, 3  ;;  %2242 = vmatprep.subr.bf16.mxu0 %v2352_v4  ;;  %v2252_v20 = vpack.c.bf16 %v774_v19, %v773_v18  ;;  %v2255_v23 = vpack.c.bf16 %v776_v22, %v775_v21  ;;  %v777_v24 = vld [vmem:[%s2824_s7 + $0x60] sm:$0xf]  ;;  %2159 = vmatprep.subr.mxu1 %v2354_v16 }
  0x28   : > { %s743_s25 = scalar_lea.vmem %s2825_s3, %s2517_s26  ;;  %s739_s2 = scalar_lea.vmem %s2826_s1, %s2517_s26  ;;  %v873_v34 = vld [vmem:[%s2829_s4] sm:$0xff] }
  0x29   : > { %v756_v10 = vld [vmem:[%s743_s25] sm:$0xff]  ;;  %s2830_s4 = sld [smem:[#allocation13_spill]]  ;;  %s2832_s25 = sld [smem:[#allocation9_spill]] }
  0x2a   : > { %v755_v11 = vld [vmem:[%s739_s2] sm:$0xff]  ;;  %vm778_vm0 = vcmp.eq.s32.totalorder %v756_v10, 0  ;;  %2244 = vmatpush3.bf16.msra.mxu0 %v2243_v7  ;;  %s2827_s2 = sld [smem:[#allocation11_spill]]  ;;  %s2358_s1 = smov 112  }
  0x2b   : > { %760 = vperm.xlu0 %2311, %v755_v11   ;;  %v781_v13 = vsel %vm778_vm0, 1, %v2351_v3  ;;  %2245 = vmatprep.subr.bf16.mxu0 %v2352_v4  ;;  %v2038_v56 = vld [vmem:[%s2831_s28] ss:$0 sm:$0xff]  ;;  %s754_s28 = scalar_lea.vmem %s2808_s24, %s2517_s26 }
  0x2c   : > { %v1167_v19 = vld [vmem:[%s2795_s11] sm:$0xff] }
  0x2e   : > { %2247 = vmatpush3.bf16.msra.mxu0 %v2246_v12 }
  0x2f   : > { %783 = vperm.xlu0 %2311, %v781_v13   ;;  %2248 = vmatprep.subr.bf16.mxu0 %v2352_v4  ;;  %v2037_v54 = vld [vmem:[%s2830_s4] ss:$0 sm:$0xff]  ;;  %s746_s8 = scalar_lea.vmem %s2832_s25, %s2513_s5  ;;  %s2356_s5 = smov 64  }
  0x30   : > { %s2828_s0 = smov %s2827_s2  ;;  %v2033_v30 = vld [vmem:[%s2827_s2] ss:$0 sm:$0xff]  ;;  %s2355_s2 = smov 96  }
  0x31   : > { %v2034_v31 = vld [vmem:[%s2828_s0 + $0x1] ss:$0 sm:$0xff]  ;;  %v2624_v0 = vld [vmem:[%s746_s8] sm:$0x1]  ;;  %s2357_s4 = smov 80   ;;  %s2833_s25 = sld [smem:[#allocation15_spill]] }
  0x32   : > { %2250 = vmatpush3.bf16.msra.mxu0 %v2249_v17  ;;  %v876_v2 = vsub.f32 1.0, %v2624_v0  ;;  %s1818_s8 = sld [smem:[#allocation3 + %s2494_s29]] }
  0x33   : > { %2251 = vmatprep.subr.bf16.mxu0 %v2352_v4 }
  0x34   : > { %v877_v3 = vmul.f32 -10000.0, %v876_v2  ;;  %v1522_v2 = vld [vmem:[%s2799_s15] sm:$0xff] }
  0x36   : > { %2253 = vmatpush3.bf16.msra.mxu0 %v2252_v20  ;;  %v1076_v6 = vrot.slane %v877_v3, %v1075_v5  ;;  %v1168_v20 = vld [vmem:[%s2795_s11 + $0x8] sm:$0xff] }
  0x37   : > { %2254 = vmatprep.subr.bf16.mxu0 %v2352_v4  ;;  %v2267_v21 = vpack.c.bf16 %v1168_v20, %v1167_v19  ;;  %v1523_v3 = vld [vmem:[%s2799_s15 + $0x8] sm:$0xff]  ;;  %v1615_v19 = vld [vmem:[%s2801_s17] sm:$0xff] }
  0x38   : > { %v1616_v20 = vld [vmem:[%s2801_s17 + $0x8] sm:$0xff]  ;;  %v2054_v45 = vld [vmem:[%s2833_s25] ss:$0 sm:$0xff] }
  0x3a   : > { %2256 = vmatpush3.bf16.msra.mxu0 %v2255_v23 }
  0x3b   : > { %2143 = vmatprep.subr.mxu0 %v2354_v16 }
  0x3e   : > { %2144 = vmatpush3.msk.msra.mxu0 %vm799_vm2, %v777_v24 }
  0x3f   : > { %2266 = vmatprep.subr.bf16.mxu0 %v2352_v4 }
  0xaa   : > { %v761_v27 = vpop.permute.xlu0 %760 }
  0xab   : > { %vm762_vm4 = vcmp.eq.s32.totalorder %v2565_v26, %v761_v27 }
  0xac   : > { %v2032_v28 = vsel %vm762_vm4, 1.0, %v2354_v16 }
  0xad   : > { %2146 = vmatmul.mubr.msk.f32.vlgmr.msra.gmra.mrb[0].mxu0 %vm795_vm3, %v2032_v28 }
  0xae   : > { %2190 = vmatprep.mubr.msk.f32.mxu0 %vm2353_vm1, %v2354_v16  ;;  %v784_v29 = vpop.permute.xlu0 %783  ;;  %2268 = vmatpush3.bf16.msra.mxu0 %v2267_v21  ;;  %v2276_v21 = vpack.c.bf16 %v1616_v20, %v1615_v19  ;;  %v2058_v19 = vld [vmem:[%s2806_s22] ss:$0 sm:$0xff] }
  0xaf   : > { %vm785_vm5 = vcmp.eq.s32.totalorder %v784_v29, 1  ;;  %2275 = vmatprep.subr.bf16.mxu0 %v2352_v4 }
  0xb0   : > { %v794_v32 = vsel %vm785_vm5, %v2033_v30, %v2034_v31 }
 0x180   : > { %v869_v33 = vpop.f32.mrb[0].mxu0 }
 0x181   : > { %v870_v35 = vadd.f32 %v869_v33, %v794_v32  ;;  %v2147_v36 = vpop.f32.mrb[1].mxu0 }
 0x183   : > { %v874_v37 = vadd.f32 %v873_v34, %v870_v35 }
 0x185   : > { %v881_v38 = vsel %vm880_vm6, %v874_v37, 0.0 }
 0x186   : > { %882 = vadd.xlane.f32.xlu1 %v881_v38 }
 0x213   : > { %v883_v39 = vpop.xlane.xlu1 %882 }
 0x214   : > { %v885_v40 = vmul.f32 0.03125, %v883_v39 }
 0x216   : > { %v886_v41 = vsub.f32 %v874_v37, %v885_v40 }
 0x218   : > { %v887_v42 = vmul.f32 %v886_v41, %v886_v41 }
 0x21a   : > { %v888_v43 = vsel %vm880_vm6, %v887_v42, 0.0 }
 0x21b   : > { %889 = vadd.xlane.f32.xlu1 %v888_v43 }
 0x2a8   : > { %v890_v50 = vpop.xlane.xlu1 %889 }
 0x2a9   : > { %v891_v51 = vmul.f32 0.03125, %v890_v50 }
 0x2ab   : > { %v892_v52 = vadd.f32 1e-12, %v891_v51 }
 0x2ad   : > { %2312 = vrsqrt.f32 %v892_v52  ;;  %v2049_v52 = vld [vmem:[%s2796_s12] ss:$0 sm:$0xff] }
 0x2b7   : > { %v2313_v53 = vpop.eup %2312 }
 0x2b8   : > { %v894_v55 = vmul.f32 %v2313_v53, %v886_v41 }
 0x2ba   : > { %v901_v57 = vmul.f32 %v2037_v54, %v894_v55 }
 0x2bc   : > { %v2602_v58 = vadd.f32 %v2038_v56, %v901_v57 }
 0x2be   : > { %2157 = vmatmul.mubr.msk.f32.vlgmr.msra.gmra.mrb[0].mxu1 %vm880_vm6, %v2602_v58 }
 0x2bf   : > { %2161 = vmatprep.mubr.msk.f32.mxu1 %vm2353_vm1, %v2354_v16 }
 0x391   : > { %v989_v60 = vpop.f32.mrb[0].mxu1 }
 0x392   : > { %v2611_v61 = vadd.f32 %v2039_v59, %v989_v60  ;;  %v2158_v62 = vpop.f32.mrb[1].mxu1 }
 0x394   : > { %994 = vrot.lane.b32.xlu0 %v2611_v61, %s2355_s2  ;;  %s2359_s2 = smov 48  }
 0x406   : > { %v995_v63 = vpop.permute.xlu0 %994 }
 0x407   : > { %2160 = vmatpush3.xpose.msk.msra.mxu1 %vm996_vm7, %v995_v63 }
 0x408   : > { %2164 = vmatprep.subr.mxu1 %v2354_v16 }
 0x40a   : > { %2162 = vmatmul.mubr.msk.f32.vlgmr.msra.gmra.mrb[2].mxu1 %vm996_vm7, %v2611_v61 }
 0x40b   : > { %2166 = vmatprep.mubr.msk.f32.mxu1 %vm2353_vm1, %v2354_v16 }
 0x4dd   : > { %v1067_v7 = vpop.f32.mrb[2].mxu1 }
 0x4de   : > { %v1071_v8 = vmul.f32 0.25, %v1067_v7  ;;  %v2163_v9 = vpop.f32.mrb[3].mxu1  ;;  %v1525_v7 = vld [vmem:[%s2799_s15 + $0x18] sm:$0xff] }
 0x4e0   : > { %v1078_v10 = vadd.f32 %v1076_v6, %v1071_v8 }
 0x4e2   : > { %v1080_v11 = vsel %vm1079_vm8, %v1078_v10, -inf }
 0x4e3   : > { %1081 = vmax.xlane.f32.xlu1 %v1080_v11 }
 0x4f4   : > { %1091 = vrot.lane.b32.xlu1 %v2611_v61, %s2356_s5  ;;  %s2060_s5 = sadd.s32 4294967294, %s1818_s8 }
 0x4f8   : > { %1171 = vrot.lane.b32.xlu1 %v2611_v61, %s2357_s4 }
 0x4fc   : > { %1169 = vrot.lane.b32.xlu1 %v2611_v61, %s2358_s1 }
 0x570   : > { %v1082_v12 = vpop.xlane.xlu1 %1081 }
 0x571   : > { %v1083_v13 = vsub.f32 %v1078_v10, %v1082_v12 }
 0x573   : > { %v1084_v14 = vmul.f32 1.442695, %v1083_v13  ;;  %v2050_v13 = vld [vmem:[%s2797_s13] ss:$0 sm:$0xff] }
 0x574   : > { %v1092_v15 = vpop.permute.xlu1 %1091 }
 0x575   : > { %2314 = vpow2.f32 %v1084_v14  ;;  %2165 = vmatpush3.msra.mxu1 %v1092_v15  ;;  %v2051_v15 = vld [vmem:[%s2798_s14] ss:$0 sm:$0xff] }
 0x576   : > { %2169 = vmatprep.subr.mxu1 %v2354_v16 }
 0x578   : > { %v1172_v24 = vpop.permute.xlu1 %1171 }
 0x57c   : > { %v1170_v27 = vpop.permute.xlu1 %1169 }
 0x57f   : > { %v2315_v17 = vpop.eup %2314 }
 0x580   : > { %v1086_v18 = vsel %vm1079_vm8, %v2315_v17, 0.0 }
 0x581   : > { %1087 = vadd.xlane.f32.xlu0 %v1086_v18 }
 0x60e   : > { %v1088_v22 = vpop.xlane.xlu0 %1087 }
 0x60f   : > { %2316 = vrcp.f32 %v1088_v22  ;;  %v1617_v22 = vld [vmem:[%s2801_s17 + $0x10] sm:$0xff] }
 0x619   : > { %v2317_v23 = vpop.eup %2316 }
 0x61a   : > { %v1090_v25 = vmul.f32 %v2317_v23, %v2315_v17  ;;  %v1618_v23 = vld [vmem:[%s2801_s17 + $0x18] sm:$0xff] }
 0x61c   : > { %2167 = vmatmul.mubr.msk.f32.vlgmr.msra.gmra.mrb[4].mxu1 %vm1079_vm8, %v1090_v25  ;;  %v1619_v25 = vld [vmem:[%s2801_s17 + $0x20] sm:$0xff] }
 0x61d   : > { %2170 = vmatpush3.xpose.msk.msra.mxu1 %vm996_vm7, %v1172_v24  ;;  %2171 = vmatprep.mubr.msk.f32.mxu1 %vm2353_vm1, %v2354_v16  ;;  %v2279_v24 = vpack.c.bf16 %v1618_v23, %v1617_v22 }
 0x61e   : > { %2174 = vmatprep.subr.mxu1 %v2354_v16 }
 0x620   : > { %2172 = vmatmul.mubr.msk.f32.vlgmr.msra.gmra.mrb[6].mxu1 %vm996_vm7, %v1170_v27  ;;  %v1620_v27 = vld [vmem:[%s2801_s17 + $0x28] sm:$0xff] }
 0x621   : > { %2176 = vmatprep.mubr.msk.f32.mxu1 %vm2353_vm1, %v2354_v16 }
 0x6ef   : > { %v1163_v28 = vpop.f32.mrb[4].mxu1 }
 0x6f0   : > { %v2168_v29 = vpop.f32.mrb[5].mxu1  ;;  %2191 = vmatmul.mubr.msk.f32.vlgmr.msra.gmra.mrb[2].mxu0 %vm996_vm7, %v1163_v28  ;;  %v2282_v28 = vpack.c.bf16 %v1620_v27, %v1619_v25 }
 0x6f1   : > { %2220 = vmatprep.mubr.msk.f32.mxu0 %vm2353_vm1, %v2354_v16  ;;  %2277 = vmatpush3.bf16.msra.mxu0 %v2276_v21  ;;  %v1621_v29 = vld [vmem:[%s2801_s17 + $0x30] sm:$0xff] }
 0x6f2   : > { %2278 = vmatprep.subr.bf16.mxu0 %v2352_v4 }
 0x6f3   : > { %v1243_v30 = vpop.f32.mrb[6].mxu1 }
 0x6f4   : > { %v1247_v31 = vmul.f32 0.25, %v1243_v30  ;;  %v2173_v32 = vpop.f32.mrb[7].mxu1  ;;  %v1622_v30 = vld [vmem:[%s2801_s17 + $0x38] sm:$0xff] }
 0x6f5   : > { %2280 = vmatpush3.bf16.msra.mxu0 %v2279_v24  ;;  %v2052_v32 = vld [vmem:[%s2800_s16] ss:$0 sm:$0xff] }
 0x6f6   : > { %v1248_v33 = vadd.f32 %v1247_v31, %v1076_v6  ;;  %v2270_v6 = vpack.c.bf16 %v1523_v3, %v1522_v2  ;;  %2281 = vmatprep.subr.bf16.mxu0 %v2352_v4  ;;  %v2285_v31 = vpack.c.bf16 %v1622_v30, %v1621_v29 }
 0x6f8   : > { %v1249_v34 = vsel %vm1079_vm8, %v1248_v33, -inf }
 0x6f9   : > { %1250 = vmax.xlane.f32.xlu1 %v1249_v34  ;;  %2283 = vmatpush3.bf16.msra.mxu0 %v2282_v28 }
 0x6fa   : > { %2284 = vmatprep.subr.bf16.mxu0 %v2352_v4 }
 0x6fd   : > { %2286 = vmatpush3.bf16.msra.mxu0 %v2285_v31 }
 0x786   : > { %v1251_v35 = vpop.xlane.xlu1 %1250 }
 0x787   : > { %v1252_v36 = vsub.f32 %v1248_v33, %v1251_v35 }
 0x789   : > { %v1253_v37 = vmul.f32 1.442695, %v1252_v36 }
 0x78b   : > { %2318 = vpow2.f32 %v1253_v37 }
 0x795   : > { %v2319_v38 = vpop.eup %2318 }
 0x796   : > { %v1255_v39 = vsel %vm1079_vm8, %v2319_v38, 0.0 }
 0x797   : > { %1256 = vadd.xlane.f32.xlu0 %v1255_v39 }
 0x7ad   : > { %1260 = vrot.lane.b32.xlu0 %v2611_v61, %s2359_s2  ;;  %s750_s2 = scalar_lea.vmem %s2807_s23, %s2517_s26 }
 0x7c3   : > { %v1480_v40 = vpop.f32.mrb[2].mxu0 }
 0x7c4   : > { %v2192_v41 = vpop.f32.mrb[3].mxu0 }
 0x824   : > { %v1257_v42 = vpop.xlane.xlu0 %1256 }
 0x825   : > { %2320 = vrcp.f32 %v1257_v42 }
 0x828   : > { %v1261_v43 = vpop.permute.xlu0 %1260 }
 0x829   : > { %2175 = vmatpush3.msra.mxu1 %v1261_v43 }
 0x82a   : > { %2263 = vmatprep.subr.bf16.mxu1 %v2352_v4 }
 0x82f   : > { %v2321_v46 = vpop.eup %2320 }
 0x830   : > { %v1259_v48 = vmul.f32 %v2321_v46, %v2319_v38 }
 0x832   : > { %2177 = vmatmul.mubr.msk.f32.vlgmr.msra.gmra.mrb[8].mxu1 %vm1079_vm8, %v1259_v48 }
 0x833   : > { %2265 = vmatpush3.bf16.msra.mxu1 %v2264_v47  ;;  %2183 = vmatprep.mubr.msk.f32.mxu1 %vm2353_vm1, %v2354_v16 }
 0x834   : > { %2269 = vmatprep.subr.bf16.mxu1 %v2352_v4 }
 0x905   : > { %v1332_v49 = vpop.f32.mrb[8].mxu1 }
 0x906   : > { %v2178_v50 = vpop.f32.mrb[9].mxu1  ;;  %2184 = vmatmul.mubr.msk.f32.vlgmr.msra.gmra.mrb[10].mxu1 %vm996_vm7, %v1332_v49 }
 0x907   : > { %2201 = vmatprep.mubr.msk.f32.mxu1 %vm2353_vm1, %v2354_v16  ;;  %2271 = vmatpush3.bf16.msra.mxu1 %v2270_v6 }
 0x908   : > { %2272 = vmatprep.subr.bf16.mxu1 %v2352_v4 }
 0x9d9   : > { %v1407_v51 = vpop.f32.mrb[10].mxu1 }
 0x9da   : > { %v1481_v53 = vadd.f32 %v1480_v40, %v1407_v51  ;;  %v2185_v54 = vpop.f32.mrb[11].mxu1 }
 0x9dc   : > { %v1491_v55 = vadd.f32 %v2049_v52, %v1481_v53 }
 0x9de   : > { %v1492_v56 = vadd.f32 %v1491_v55, %v2602_v58  ;;  %v1524_v58 = vld [vmem:[%s2799_s15 + $0x10] sm:$0xff] }
 0x9df   : > { %v2273_v8 = vpack.c.bf16 %v1525_v7, %v1524_v58  ;;  %v2056_v58 = vld [vmem:[%s2803_s19] ss:$0 sm:$0xff] }
 0x9e0   : > { %v1495_v57 = vsel %vm880_vm6, %v1492_v56, 0.0 }
 0x9e1   : > { %1496 = vadd.xlane.f32.xlu0 %v1495_v57  ;;  %2274 = vmatpush3.bf16.msra.mxu1 %v2273_v8  ;;  %v1735_v57 = vld [vmem:[%s2805_s21 + $0x8] sm:$0xff]  ;;  %v2057_v8 = vld [vmem:[%s2804_s20] ss:$0 sm:$0xff] }
 0x9e2   : > { %2287 = vmatprep.subr.bf16.mxu1 %v2352_v4 }
 0xa6e   : > { %v1497_v59 = vpop.xlane.xlu0 %1496 }
 0xa6f   : > { %v1498_v60 = vmul.f32 0.03125, %v1497_v59 }
 0xa71   : > { %v1499_v61 = vsub.f32 %v1492_v56, %v1498_v60  ;;  %v1734_v56 = vld [vmem:[%s2805_s21] sm:$0xff]  ;;  %v1736_v60 = vld [vmem:[%s2805_s21 + $0x10] sm:$0xff] }
 0xa72   : > { %v2288_v59 = vpack.c.bf16 %v1735_v57, %v1734_v56 }
 0xa73   : > { %v1500_v62 = vmul.f32 %v1499_v61, %v1499_v61 }
 0xa75   : > { %v1501_v63 = vsel %vm880_vm6, %v1500_v62, 0.0 }
 0xa76   : > { %1502 = vadd.xlane.f32.xlu1 %v1501_v63 }
 0xb03   : > { %v1503_v9 = vpop.xlane.xlu1 %1502 }
 0xb04   : > { %v1504_v10 = vmul.f32 0.03125, %v1503_v9 }
 0xb06   : > { %v1505_v11 = vadd.f32 1e-12, %v1504_v10  ;;  %v1822_v10 = vstv %s2060_s5 }
 0xb07   : > { %vm1823_vm10 = vcmp.lt.s32.totalorder %v2626_v1, %v1822_v10 }
 0xb08   : > { %2322 = vrsqrt.f32 %v1505_v11  ;;  %v1824_v11 = vadd.s32 1, %v2626_v1 }
 0xb12   : > { %v2323_v12 = vpop.eup %2322 }
 0xb13   : > { %v1507_v14 = vmul.f32 %v2323_v12, %v1499_v61  ;;  %v1737_v61 = vld [vmem:[%s2805_s21 + $0x18] sm:$0xff]  ;;  %v1825_v12 = vadd.s32 2, %v2626_v1 }
 0xb14   : > { %v2291_v62 = vpack.c.bf16 %v1737_v61, %v1736_v60 }
 0xb15   : > { %v1514_v17 = vmul.f32 %v2050_v13, %v1507_v14  ;;  %v1826_v13 = vsel %vm1823_vm10, %v1824_v11, %v1825_v12  ;;  %v1909_v14 = vrot.slane %v2624_v0, %v1075_v5 }
 0xb16   : > { %vm1827_vm11 = vcmp.eq.s32.totalorder %v2565_v26, %v1826_v13 }
 0xb17   : > { %v1521_v18 = vadd.f32 %v2051_v15, %v1514_v17  ;;  %v2061_v15 = vsel %vm1827_vm11, 1.0, %v2354_v16 }
 0xb18   : > { %v1911_v17 = vmul.f32 %v2061_v15, %v1909_v14 }
 0xb19   : > { %2202 = vmatmul.mubr.msk.f32.vlgmr.msra.gmra.mrb[12].mxu1 %vm880_vm6, %v1521_v18 }
 0xb1a   : > { %2231 = vmatprep.mubr.msk.f32.mxu1 %vm2353_vm1, %v2354_v16  ;;  %2289 = vmatpush3.bf16.msra.mxu1 %v2288_v59 }
 0xb1b   : > { %2290 = vmatprep.subr.bf16.mxu1 %v2352_v4 }
 0xb1e   : > { %2292 = vmatpush3.bf16.msra.mxu1 %v2291_v62 }
 0xb1f   : > { %2234 = vmatprep.subr.mxu1 %v2354_v16 }
 0xbec   : > { %v1602_v33 = vpop.f32.mrb[12].mxu1 }
 0xbed   : > { %v1603_v34 = vadd.f32 %v2052_v32, %v1602_v33  ;;  %v2203_v35 = vpop.f32.mrb[13].mxu1 }
 0xbef   : > { %v1606_v36 = vmul.f32 %v1603_v34, %v1603_v34 }
 0xbf1   : > { %v1607_v37 = vmul.f32 %v1606_v36, %v1603_v34 }
 0xbf3   : > { %v1608_v38 = vmul.f32 0.044715, %v1607_v37 }
 0xbf5   : > { %v1609_v39 = vadd.f32 %v1608_v38, %v1603_v34 }
 0xbf7   : > { %v1610_v40 = vmul.f32 0.7978846, %v1609_v39 }
 0xbf9   : > { %2324 = vtanh.f32 %v1610_v40 }
 0xc03   : > { %v2325_v41 = vpop.eup %2324 }
 0xc04   : > { %v1612_v42 = vadd.f32 1.0, %v2325_v41 }
 0xc06   : > { %v1613_v43 = vmul.f32 0.5, %v1612_v42 }
 0xc08   : > { %v1614_v44 = vmul.f32 %v1613_v43, %v1603_v34 }
 0xc0a   : > { %2221 = vmatmul.mubr.msk.f32.vlgmr.msra.gmra.mrb[4].mxu0 %vm1630_vm9, %v1614_v44 }
 0xcdd   : > { %v1700_v46 = vpop.f32.mrb[4].mxu0 }
 0xcde   : > { %v1701_v47 = vadd.f32 %v2054_v45, %v1700_v46  ;;  %v2222_v48 = vpop.f32.mrb[5].mxu0 }
 0xce0   : > { %v1704_v49 = vadd.f32 %v1701_v47, %v1521_v18  ;;  %v1913_v18 = vsel %vm1912_vm12, %v1911_v17, 0.0 }
 0xce2   : > { %v1707_v50 = vsel %vm880_vm6, %v1704_v49, 0.0 }
 0xce3   : > { %1708 = vadd.xlane.f32.xlu1 %v1707_v50 }
 0xd70   : > { %v1709_v51 = vpop.xlane.xlu1 %1708 }
 0xd71   : > { %v1710_v52 = vmul.f32 0.03125, %v1709_v51 }
 0xd73   : > { %v1711_v53 = vsub.f32 %v1704_v49, %v1710_v52 }
 0xd75   : > { %v1712_v54 = vmul.f32 %v1711_v53, %v1711_v53 }
 0xd77   : > { %v1713_v55 = vsel %vm880_vm6, %v1712_v54, 0.0 }
 0xd78   : > { %1714 = vadd.xlane.f32.xlu1 %v1713_v55 }
 0xd7c   : > { %1914 = vadd.xlane.f32.xlu1 %v1913_v18 }
 0xe05   : > { %v1715_v63 = vpop.xlane.xlu1 %1714 }
 0xe06   : > { %v1716_v2 = vmul.f32 0.03125, %v1715_v63 }
 0xe08   : > { %v1717_v3 = vadd.f32 1e-12, %v1716_v2 }
 0xe0a   : > { %2326 = vrsqrt.f32 %v1717_v3 }
 0xe14   : > { %v2327_v6 = vpop.eup %2326 }
 0xe15   : > { %v1719_v7 = vmul.f32 %v2327_v6, %v1711_v53 }
 0xe17   : > { %v1726_v4 = vmul.f32 %v2056_v58, %v1719_v7 }
 0xe19   : > { %v1733_v9 = vadd.f32 %v2057_v8, %v1726_v4 }
 0xe1b   : > { %2232 = vmatmul.mubr.msk.f32.vlgmr.msra.gmra.mrb[14].mxu1 %vm880_vm6, %v1733_v9 }
 0xe1c   : > { %2236 = vmatprep.mubr.msk.f32.mxu1 %vm2353_vm1, %v2354_v16  ;;  %v1915_v16 = vpop.xlane.xlu1 %1914 }
 0xe1d   : > { %1917 = vst.msk [vmem:[%s754_s28] sm:$0x3f] %vm1916_vm13, %v1915_v16 }
 0xeee   : > { %v1814_v20 = vpop.f32.mrb[14].mxu1 }
 0xeef   : > { %v1815_v21 = vadd.f32 %v2058_v19, %v1814_v20  ;;  %v2233_v22 = vpop.f32.mrb[15].mxu1 }
 0xef1   : > { %2235 = vmatpush3.msra.mxu1 %v1815_v21 }
 0xef2   : > { %2237 = vmatmul.mubr.msk.f32.vlgmr.msra.gmra.mrb[16].mxu1 %vm1079_vm8, %v2061_v15 }
 0xfc5   : > { %v1899_v26 = vpop.f32.mrb[16].mxu1 }
 0xfc6   : > { %1904 = vst.msk [vmem:[%s750_s2] sm:$0x3f] %vm1903_vm14, %v1899_v26  ;;  %v2238_v0 = vpop.f32.mrb[17].mxu1 }
 0xfc7 PF: > { %s2834_s30 = sld [smem:[#allocation5_spill]] }
 0xfcd   : > { %s41_s2 = sadd.s32 1, %s2834_s30  }
 0xfce   : > { %p38_p9 = scmp.ge.s32.totalorder %s41_s2, 4  }
 0xfd0   :  { %40 = sbr.rel (!%p38_p9) target bundleno = 25 (0x19), region = 156 }

</bundles_post_ra>
